<compile_context>
chip_gen: v7x
topology: tpu7x:2x2x1
jax: 0.10.0
libtpu: 0.0.40
codegen_flags: <defaults>
</compile_context>

<pallas_src>
import math

import jax
import jax.numpy as jnp
from jax.experimental import pallas as pl
from jax.experimental.pallas import tpu as pltpu

EMBED_SIZE = 32
HEADS = 4
HEAD_DIM = EMBED_SIZE // HEADS


def self_attention_kernel(v_ref, w_ref, bo_ref, out_ref):
    # v_ref:  (N, Lv, E)  values (only live input of the reference forward)
    # w_ref:  (E, E)      fused weight  kron(I_H, Wv.T) @ Wo.T
    # bo_ref: (1, E)      fc_out bias
    # out_ref:(N, E)      one output row per batch element (all Lq rows equal;
    #                     the Lq broadcast happens in the wrapper).
    v_sum = jnp.sum(v_ref[...], axis=1)                            # (N, E) sublane reduce
    out = jnp.dot(v_sum, w_ref[...],
                  preferred_element_type=jnp.float32) + bo_ref[...]
    out_ref[...] = out.astype(out_ref.dtype)                       # single tiny store


def self_attention(values, keys, query, mask, params):
    """values/keys/query: (N, L, E); mask: (N, 1 or H, Lq, Lk); returns (N, Lq, E).

    `keys` and `mask` (and `query` beyond its length) provably do not affect the
    forward output of the reference module (see header), so they are never
    shipped to the kernel — no mask broadcast, no Q/K DMAs, no dead matmuls.
    """
    N, Lq, E = query.shape
    assert E == EMBED_SIZE
    del keys, mask  # dead inputs for this module's forward pass

    # Fold the per-head Wv (block-diagonal) and fc_out Wo into one (E, E) weight.
    # Constant-folds under jit; either way it is a tiny one-time host-side cost.
    eye_h = jnp.eye(HEADS, dtype=jnp.float32)
    w_fused = jnp.kron(eye_h, params["Wv"].T) @ params["Wo"].T      # (E, E)
    bo2d = params["bo"].reshape(1, E)

    # Single-step kernel (no grid): whole arrays live in VMEM (<4 KB total), so
    # there is nothing to pipeline and no per-step grid overhead on any chip.
    rows = pl.pallas_call(
        self_attention_kernel,
        out_shape=jax.ShapeDtypeStruct((N, E), jnp.float32),
        in_specs=[
            pl.BlockSpec(memory_space=pltpu.MemorySpace.VMEM),   # values (N, Lv, E)
            pl.BlockSpec(memory_space=pltpu.MemorySpace.VMEM),   # fused weight (E, E)
            pl.BlockSpec(memory_space=pltpu.MemorySpace.VMEM),   # bias (1, E)
        ],
        out_specs=pl.BlockSpec(memory_space=pltpu.MemorySpace.VMEM),
    )(values, w_fused, bo2d)

    # Lq replication outside the kernel (fuses with downstream consumers).
    return jnp.broadcast_to(rows[:, None, :], (N, Lq, E))


def ref_forward(values, keys, query, mask, params):
    """Full-fidelity pure-JAX replica of the PyTorch forward (same exact ops)."""
    N, Lq, E = query.shape
    hd = HEAD_DIM
    v = values.reshape(N, -1, HEADS, hd)
    k = keys.reshape(N, -1, HEADS, hd)
    q = query.reshape(N, -1, HEADS, hd)
    v = jnp.einsum("nlhd,od->nlho", v, params["Wv"])
    k = jnp.einsum("nlhd,od->nlho", k, params["Wk"])
    q = jnp.einsum("nlhd,od->nlho", q, params["Wq"])
    energy = jnp.einsum("nqhd,nkhd->nhqk", q, k)
    energy = jnp.where(mask == 0, jnp.float32(-1e20), energy)
    attn = jax.nn.softmax(energy / (EMBED_SIZE ** 0.5), axis=3)
    # NOTE: 'nhqk,nvhd->nqhd' (k and v summed independently) — faithful to the module.
    out = jnp.einsum("nhqk,nvhd->nqhd", attn, v).reshape(N, Lq, HEADS * hd)
    return out @ params["Wo"].T + params["bo"]


if __name__ == "__main__":
    key = jax.random.PRNGKey(0)
    ks = jax.random.split(key, 9)

    N, Lq, Lk, Lv = 2, 8, 8, 8
    values = jax.random.normal(ks[0], (N, Lv, EMBED_SIZE), jnp.float32)
    keys_in = jax.random.normal(ks[1], (N, Lk, EMBED_SIZE), jnp.float32)
    query = jax.random.normal(ks[2], (N, Lq, EMBED_SIZE), jnp.float32)
    mask = (jax.random.uniform(ks[3], (N, 1, Lq, Lk)) > 0.2).astype(jnp.float32)

    params = {
        "Wq": jax.random.normal(ks[4], (HEAD_DIM, HEAD_DIM), jnp.float32) / math.sqrt(HEAD_DIM),
        "Wk": jax.random.normal(ks[5], (HEAD_DIM, HEAD_DIM), jnp.float32) / math.sqrt(HEAD_DIM),
        "Wv": jax.random.normal(ks[6], (HEAD_DIM, HEAD_DIM), jnp.float32) / math.sqrt(HEAD_DIM),
        "Wo": jax.random.normal(ks[7], (EMBED_SIZE, EMBED_SIZE), jnp.float32) / math.sqrt(EMBED_SIZE),
        "bo": jax.random.normal(ks[8], (EMBED_SIZE,), jnp.float32) * 0.1,
    }

    out = self_attention(values, keys_in, query, mask, params)
    out = jax.block_until_ready(out)

    # CI gate (per review): the algebraic collapse is only valid for this exact
    # reference ('nhqk,nvhd->nqhd' einsum, finite -1e20 mask fill).
    ref = ref_forward(values, keys_in, query, mask, params)
    assert out.shape == (N, Lq, EMBED_SIZE)
    if not jnp.allclose(out, ref, atol=5e-2, rtol=5e-2):
        raise SystemExit("mismatch between Pallas kernel and JAX reference")
    print("KERNEL_OK")
</pallas_src>

<mosaic_0001>
module attributes {stable_mosaic.version = 11 : i64} {
  func.func @self_attention_kernel(%arg0: memref<2x8x32xf32, #tpu.memory_space<vmem>>, %arg1: memref<32x32xf32, #tpu.memory_space<vmem>>, %arg2: memref<1x32xf32, #tpu.memory_space<vmem>>, %arg3: memref<2x32xf32, #tpu.memory_space<vmem>>) attributes {dimension_semantics = [], scalar_prefetch = 0 : i64, scratch_operands = 0 : i64, tpu.core_type = #tpu.core_type<tc>} {
    %c0 = arith.constant 0 : index
    %c0_0 = arith.constant 0 : index
    %c0_1 = arith.constant 0 : index
    %0 = vector.load %arg0[%c0, %c0_0, %c0_1] : memref<2x8x32xf32, #tpu.memory_space<vmem>>, vector<2x8x32xf32>
    %cst = arith.constant dense<0.000000e+00> : vector<2x32xf32>
    %1 = vector.multi_reduction <add>, %0, %cst [1] : vector<2x8x32xf32> to vector<2x32xf32>
    %c0_2 = arith.constant 0 : index
    %c0_3 = arith.constant 0 : index
    %2 = vector.load %arg1[%c0_2, %c0_3] : memref<32x32xf32, #tpu.memory_space<vmem>>, vector<32x32xf32>
    %cst_4 = arith.constant dense<0.000000e+00> : vector<2x32xf32>
    %3 = tpu.matmul %1, %2, %cst_4 {dimension_numbers = #tpu.dot_dimension_numbers<[1], [0], [0], [1], [0, 0, 1, 1], [], []>} : vector<2x32xf32>, vector<32x32xf32>, vector<2x32xf32> -> vector<2x32xf32>
    %c0_5 = arith.constant 0 : index
    %c0_6 = arith.constant 0 : index
    %4 = vector.load %arg2[%c0_5, %c0_6] : memref<1x32xf32, #tpu.memory_space<vmem>>, vector<1x32xf32>
    %5 = vector.broadcast %4 : vector<1x32xf32> to vector<2x32xf32>
    %6 = arith.addf %3, %5 : vector<2x32xf32>
    %c0_7 = arith.constant 0 : index
    %c0_8 = arith.constant 0 : index
    %7 = vector.load %arg3[%c0_7, %c0_8] : memref<2x32xf32, #tpu.memory_space<vmem>>, vector<2x32xf32>
    tpu.vector_store %arg3[%c0_7, %c0_8], %6 {strides = array<i32>} : memref<2x32xf32, #tpu.memory_space<vmem>>, vector<2x32xf32>,
    return
  }
}

</mosaic_0001>

<bundles_post_ra>
// kernel: tpu_custom_call.1
= control target key start
LH: loop header
LB: loop body
LE: loop exit
PB: predicated region body
PF: predicated region fallthrough
CT: control target
= control target key end

     0   :  { %8 = vsyncpa [#allocation3], 0  ;;  %s339_s0 = inlined_call_operand.hbm [shape: f32[2,8,32], index: 0, kind: input, shape index: {}]   ;;  %s340_s1 = inlined_call_operand.hbm [shape: f32[32,32], index: 1, kind: input, shape index: {}]   ;;  %s341_s2 = inlined_call_operand.vmem [shape: f32[1,32], index: 2, kind: input, shape index: {}]   ;;  %s342_s3 = inlined_call_operand.hbm [shape: f32[2,32], index: 3, kind: output, shape index: {}]  }
   0x1   :  { %9 = vsyncpa [#allocation6], 0 }
   0x2   :  { %10 = vsyncpa [#allocation4], 0  ;;  %s269_s12 = smov [#allocation2]   ;;  %s197_s16 = scalar_lea.hbm %s339_s0, 256 }
   0x3   :  { %s16_s13 = sshll.u32 %s269_s12, 4  ;;  %p198_p0 = scmp.ne.s32.totalorder %s339_s0, %s197_s16  ;;  %s17_s13 = int_to_ptr.vmem [resolvable:$true] %s16_s13 }
   0x4   :  { %p201_p1 = scmp.lt.u32.totalorder %s197_s16, %s339_s0 }
   0x6   :  { %p203_p2 = pnand %p201_p1, %p198_p0 }
   0x8   :  { %206 = shalt.err (!%p203_p2)
}
   0x9   :  { %s207_s21 = scalar_lea.vmem %s17_s13, 256  ;;  %p212_p4 = scmp.lt.s32.totalorder %s17_s13, %s17_s13 }
   0xa   :  { %p208_p3 = scmp.ne.s32.totalorder %s17_s13, %s207_s21  ;;  %p213_p5 = scmp.lt.s32.totalorder %s207_s21, %s207_s21 }
   0xc   :  { %p214_p6 = por %p213_p5, %p212_p4 }
   0xe   :  { %p215_p7 = pnand %p214_p6, %p208_p3 }
  0x10   :  { %218 = shalt.err (!%p215_p7)
}
  0x11   :  { %s270_s22 = smov 128   ;;  %s271_s23 = smov 8  }
  0x12   :  { %22 = dma.hbm_to_vmem [thread:$0]  %s339_s0, 256, %s17_s13, [#allocation3], %s270_s22, %s270_s22, %s271_s23  }
  0x13   :  { %s272_s26 = smov [#allocation5]   ;;  %s219_s30 = scalar_lea.hbm %s340_s1, 512 }
  0x14   :  { %s28_s27 = sshll.u32 %s272_s26, 4  ;;  %p220_p8 = scmp.ne.s32.totalorder %s340_s1, %s219_s30  ;;  %s29_s27 = int_to_ptr.vmem [resolvable:$true] %s28_s27 }
  0x15   :  { %p223_p9 = scmp.lt.u32.totalorder %s219_s30, %s340_s1 }
  0x17   :  { %p225_p10 = pnand %p223_p9, %p220_p8 }
  0x19   :  { %228 = shalt.err (!%p225_p10)
}
  0x1a   :  { %s229_s8 = scalar_lea.vmem %s29_s27, 512  ;;  %p234_p12 = scmp.lt.s32.totalorder %s29_s27, %s29_s27 }
  0x1b   :  { %p230_p11 = scmp.ne.s32.totalorder %s29_s27, %s229_s8  ;;  %p235_p13 = scmp.lt.s32.totalorder %s229_s8, %s229_s8 }
  0x1d   :  { %p236_p0 = por %p235_p13, %p234_p12 }
  0x1f   :  { %p237_p1 = pnand %p236_p0, %p230_p11 }
  0x21   :  { %240 = shalt.err (!%p237_p1)
}
  0x22   :  { %34 = dma.hbm_to_vmem [thread:$0]  %s340_s1, 512, %s29_s27, [#allocation6], %s270_s22, %s270_s22, %s271_s23  }
  0x23   :  { %263 = dma.done.wait [#allocation3], 256  }
  0x24   :  { %264 = vsyncadd [#allocation3], 4294967040 }
  0x25   :  { %265 = dma.done.wait [#allocation6], 512  }
  0x26   :  { %266 = vsyncadd [#allocation6], 4294966784  ;;  %v273_v0 = vmov 0.0|0.0   ;;  %vm274_vm0 = vmmov 0   ;;  %v275_v1 = vmov 0.0   ;;  %vm45_vm1 = vcmask 261120  }
  0x27   :  { %183 = vmatprep.subr.bf16.mxu0 %v273_v0  ;;  %180 = vmatprep.mubr.msk.f32.mxu0 %vm274_vm0, %v275_v1  ;;  %v60_v2 = vld [vmem:[#allocation5] sm:$0xff]  ;;  %v61_v3 = vld [vmem:[#allocation5 + $0x8] sm:$0xff]  ;;  %v62_v4 = vld [vmem:[#allocation5 + $0x10] sm:$0xff]  ;;  %vm73_vm2 = vcmask 1041409   ;;  %s276_s11 = smov [#allocation7]   ;;  %vm147_vm3 = vcmask 254976  }
  0x28   :  { %v184_v5 = vpack.c.bf16 %v61_v3, %v60_v2  ;;  %v63_v6 = vld [vmem:[#allocation5 + $0x18] sm:$0xff]  ;;  %v43_v7 = vld [vmem:[#allocation2] sm:$0xff]  ;;  %s155_s12 = sshll.u32 %s276_s11, 4  ;;  %s156_s12 = int_to_ptr.vmem [resolvable:$true] %s155_s12 }
  0x29   :  { %v44_v8 = vld [vmem:[#allocation2 + $0x8] sm:$0xff]  ;;  %v46_v9 = vsel %vm45_vm1, %v43_v7, 0.0  ;;  %v187_v11 = vpack.c.bf16 %v63_v6, %v62_v4  ;;  %v165_v25 = vld [vmem:[%s341_s2] ss:$0 sm:$0xff]  ;;  %s241_s13 = scalar_lea.vmem %s156_s12, 32  ;;  %p246_p3 = scmp.lt.s32.totalorder %s156_s12, %s156_s12 }
  0x2a   :  { %v53_v10 = vsel %vm45_vm1, %v44_v8, 0.0  ;;  %185 = vmatpush3.bf16.msra.mxu0 %v184_v5  ;;  %v47_v12 = vrot.slane %v46_v9, 4  ;;  %p242_p2 = scmp.ne.s32.totalorder %s156_s12, %s241_s13  ;;  %p247_p4 = scmp.lt.s32.totalorder %s241_s13, %s241_s13 }
  0x2b   :  { %v54_v13 = vrot.slane %v53_v10, 4  ;;  %186 = vmatprep.subr.bf16.mxu0 %v273_v0 }
  0x2c   :  { %v48_v14 = vadd.f32 %v47_v12, %v46_v9  ;;  %p248_p5 = por %p247_p4, %p246_p3 }
  0x2d   :  { %v55_v15 = vadd.f32 %v54_v13, %v53_v10 }
  0x2e   :  { %188 = vmatpush3.bf16.msra.mxu0 %v187_v11  ;;  %v49_v16 = vrot.slane %v48_v14, 2  ;;  %p249_p6 = pnand %p248_p5, %p242_p2 }
  0x2f   :  { %v56_v17 = vrot.slane %v55_v15, 2 }
  0x30   :  { %v50_v18 = vadd.f32 %v49_v16, %v48_v14 }
  0x31   :  { %v57_v19 = vadd.f32 %v56_v17, %v55_v15 }
  0x32   :  { %v51_v20 = vrot.slane %v50_v18, 1 }
  0x33   :  { %v58_v21 = vrot.slane %v57_v19, 1 }
  0x34   :  { %v52_v22 = vadd.f32 %v51_v20, %v50_v18 }
  0x35   :  { %v59_v23 = vadd.f32 %v58_v21, %v57_v19 }
  0x37   :  { %v74_v24 = vsel %vm73_vm2, %v59_v23, %v52_v22 }
  0x38   :  { %181 = vmatmul.mubr.msk.f32.vlgmr.msra.gmra.mrb[0].mxu0 %vm45_vm1, %v74_v24 }
 0x10b   :  { %v143_v26 = vpop.f32.mrb[0].mxu0 }
 0x10c   :  { %v144_v27 = vadd.f32 %v165_v25, %v143_v26  ;;  %v182_v28 = vpop.f32.mrb[1].mxu0 }
 0x10e   :  { %148 = vst.msk [vmem:[#allocation7] sm:$0x3] %vm147_vm3, %v144_v27 }
 0x10f   :  { %252 = shalt.err (!%p249_p6)
}
 0x110   :  { %s253_s16 = scalar_lea.hbm %s342_s3, 32 }
 0x111   :  { %p254_p7 = scmp.ne.s32.totalorder %s342_s3, %s253_s16  ;;  %p257_p8 = scmp.lt.u32.totalorder %s253_s16, %s342_s3 }
 0x113   :  { %p259_p9 = pnand %p257_p8, %p254_p7 }
 0x115   :  { %262 = shalt.err (!%p259_p9)
}
 0x116   :  { %158 = dma.vmem_to_hbm [thread:$0]  %s156_s12, 32, %s342_s3, [#allocation4]  }
 0x117   :  { %267 = dma.done.wait [#allocation4], 32  }
 0x118   :  { %268 = vsyncadd [#allocation4], 4294967264 }
 0x119   :  { %162 = vsyncpa [#allocation3], 1 }
 0x11a   :  { %163 = vsyncpa [#allocation6], 1 }
 0x11b   :  { %164 = vsyncpa [#allocation4], 1 }

</bundles_post_ra>
